<compile_context>
chip_gen: v7x
topology: tpu7x:2x2x1
jax: 0.10.0
libtpu: 0.0.40
codegen_flags: <defaults>
</compile_context>

<pallas_src>
import functools

import jax
import jax.numpy as jnp
from jax.experimental import pallas as pl
from jax.experimental.pallas import tpu as pltpu


def _round_up(x, m):
    return (x + m - 1) // m * m


# --------------------------------------------------------------------------
# Phase 1: Linear + bias + LeakyReLU, tiled over rows; per-tile partial
# sum / sum-of-squares of l2 (sublane-grouped, so the reduce is VPU adds).
# --------------------------------------------------------------------------
def _stats_kernel(x_ref, w_ref, b_ref, psum_ref, pssq_ref,
                  *, n_valid, tm, mask_rows):
    l1 = jnp.dot(x_ref[...], w_ref[...],
                 preferred_element_type=jnp.float32) + b_ref[...]
    l2 = jnp.where(l1 > 0, l1, 0.2 * l1)

    # Exclude rows past the real batch (ragged trailing block) from the batch
    # statistics.  Static flag => zero cost when N is tile-aligned.
    if mask_rows:
        row = pl.program_id(0) * tm + jax.lax.broadcasted_iota(jnp.int32, l2.shape, 0)
        l2 = jnp.where(row < n_valid, l2, 0.0)

    o = l2.shape[-1]
    g = l2.reshape(tm // 8, 8, o)                       # vreg-aligned split
    psum_ref[...] = jnp.sum(g, axis=0, keepdims=True)   # (1, 8, o)
    pssq_ref[...] = jnp.sum(g * g, axis=0, keepdims=True)


# --------------------------------------------------------------------------
# Phase 2: recompute l2, apply fused BN affine, write concat([l3, x], lanes).
# --------------------------------------------------------------------------
def _apply_kernel(x_ref, w_ref, b_ref, scale_ref, shift_ref, o_ref):
    x = x_ref[...]
    l1 = jnp.dot(x, w_ref[...],
                 preferred_element_type=jnp.float32) + b_ref[...]
    l2 = jnp.where(l1 > 0, l1, 0.2 * l1)
    l3 = l2 * scale_ref[...] + shift_ref[...]
    o_ref[...] = jnp.concatenate(
        [l3.astype(o_ref.dtype), x.astype(o_ref.dtype)], axis=-1)


def hl_loop_forward(x, w, b, gamma, beta, *, eps=1e-5, row_tile=1024):
    """Forward of hl_loop (default, non-discriminator path)."""
    n, i = x.shape
    o = w.shape[1]

    # Row tile: large (amortizes per-grid-step overhead) but rounded to the
    # f32 sublane multiple; no padding of x — the trailing block is ragged.
    tm = min(_round_up(n, 8), _round_up(row_tile, 8))
    grid_rows = pl.cdiv(n, tm)
    mask_rows = (n % tm) != 0

    b2 = b.reshape(1, o).astype(jnp.float32)

    # VMEM limit derived from actual tile bytes (double-buffered tiles +
    # resident params), capped at v7x's 64 MiB physical VMEM.
    itemsize = 4
    tile_bytes = (
        2 * tm * i * itemsize            # double-buffered x tiles
        + 2 * tm * (o + i) * itemsize    # double-buffered output tiles (phase 2)
        + 4 * 8 * o * itemsize           # double-buffered partial-sum tiles
        + (i * o + 4 * o) * itemsize     # resident weight / bias / scale / shift
    )
    vmem_limit = int(min(64 * 1024 * 1024, max(8 * 1024 * 1024, 4 * tile_bytes)))

    # ---- Phase 1: per-tile partial stats; rows independent => "parallel". ----
    psum, pssq = pl.pallas_call(
        functools.partial(_stats_kernel, n_valid=n, tm=tm, mask_rows=mask_rows),
        grid=(grid_rows,),
        in_specs=[
            pl.BlockSpec((tm, i), lambda r: (r, 0)),     # x tile
            pl.BlockSpec((i, o), lambda r: (0, 0)),      # weight (resident)
            pl.BlockSpec((1, o), lambda r: (0, 0)),      # bias (resident)
        ],
        out_specs=[
            pl.BlockSpec((1, 8, o), lambda r: (r, 0, 0)),
            pl.BlockSpec((1, 8, o), lambda r: (r, 0, 0)),
        ],
        out_shape=[
            jax.ShapeDtypeStruct((grid_rows, 8, o), jnp.float32),
            jax.ShapeDtypeStruct((grid_rows, 8, o), jnp.float32),
        ],
        compiler_params=pltpu.CompilerParams(
            dimension_semantics=("parallel",),
            vmem_limit_bytes=vmem_limit),
    )(x, w, b2)

    # Tiny final reduction + fused BN affine parameters in XLA.
    s1 = jnp.sum(psum, axis=(0, 1))
    s2 = jnp.sum(pssq, axis=(0, 1))
    mean = s1 / n
    var = jnp.maximum(s2 / n - mean * mean, 0.0)   # biased variance, clamped
    scale = (gamma * jax.lax.rsqrt(var + eps)).reshape(1, o).astype(jnp.float32)
    shift = (beta - mean * (scale.reshape(-1))).reshape(1, o).astype(jnp.float32)

    # ---- Phase 2: recompute + normalize + fused concat; "parallel" rows. ----
    out = pl.pallas_call(
        _apply_kernel,
        grid=(grid_rows,),
        in_specs=[
            pl.BlockSpec((tm, i), lambda r: (r, 0)),     # x tile
            pl.BlockSpec((i, o), lambda r: (0, 0)),      # weight (resident)
            pl.BlockSpec((1, o), lambda r: (0, 0)),      # bias
            pl.BlockSpec((1, o), lambda r: (0, 0)),      # scale
            pl.BlockSpec((1, o), lambda r: (0, 0)),      # shift
        ],
        out_specs=pl.BlockSpec((tm, o + i), lambda r: (r, 0)),
        out_shape=jax.ShapeDtypeStruct((n, o + i), x.dtype),
        compiler_params=pltpu.CompilerParams(
            dimension_semantics=("parallel",),
            vmem_limit_bytes=vmem_limit),
    )(x, w, b2, scale, shift)

    return out


def hl_loop_reference(x, w, b, gamma, beta, eps=1e-5):
    l1 = x @ w + b.reshape(1, -1)
    l2 = jnp.where(l1 > 0, l1, 0.2 * l1)
    mean = jnp.mean(l2, axis=0, keepdims=True)
    var = jnp.mean((l2 - mean) ** 2, axis=0, keepdims=True)
    l3 = (l2 - mean) / jnp.sqrt(var + eps) * gamma.reshape(1, -1) + beta.reshape(1, -1)
    return jnp.concatenate([l3, x], axis=1)


if __name__ == "__main__":
    # Small shapes consistent with the module's Linear(i, o) forward.
    N, I, O = 8, 32, 128

    key = jax.random.PRNGKey(0)
    kx, kw, kb, kx2 = jax.random.split(key, 4)

    x = jax.random.normal(kx, (N, I), dtype=jnp.float32)

    # Deterministic parameter init mimicking nn.Linear's U(-1/sqrt(i), 1/sqrt(i)).
    bound = 1.0 / (I ** 0.5)
    w = jax.random.uniform(kw, (I, O), minval=-bound, maxval=bound, dtype=jnp.float32)
    b = jax.random.uniform(kb, (O,), minval=-bound, maxval=bound, dtype=jnp.float32)
    gamma = jnp.ones((O,), dtype=jnp.float32)   # BatchNorm1d weight init
    beta = jnp.zeros((O,), dtype=jnp.float32)   # BatchNorm1d bias init

    # 1) Single-tile path.
    out = jax.block_until_ready(hl_loop_forward(x, w, b, gamma, beta))
    ref = hl_loop_reference(x, w, b, gamma, beta)
    assert out.shape == (N, O + I), out.shape
    assert jnp.allclose(out, ref, atol=1e-4, rtol=1e-4), "mismatch vs reference (single tile)"

    # 2) Multi-tile path with a ragged trailing block (exercises masked global
    #    BN stats and clamped output writeback): N=20, row_tile=8 -> 3 steps.
    N2 = 20
    x2 = jax.random.normal(kx2, (N2, I), dtype=jnp.float32)
    out2 = jax.block_until_ready(hl_loop_forward(x2, w, b, gamma, beta, row_tile=8))
    ref2 = hl_loop_reference(x2, w, b, gamma, beta)
    assert out2.shape == (N2, O + I), out2.shape
    assert jnp.allclose(out2, ref2, atol=1e-4, rtol=1e-4), "mismatch vs reference (tiled)"

    print("KERNEL_OK")
</pallas_src>

<mosaic_0001>
module attributes {stable_mosaic.version = 11 : i64} {
  func.func @_stats_kernel(%arg0: i32, %arg1: memref<8x32xf32, #tpu.memory_space<vmem>>, %arg2: memref<32x128xf32, #tpu.memory_space<vmem>>, %arg3: memref<1x128xf32, #tpu.memory_space<vmem>>, %arg4: memref<1x8x128xf32, #tpu.memory_space<vmem>>, %arg5: memref<1x8x128xf32, #tpu.memory_space<vmem>>) attributes {dimension_semantics = [#tpu.dimension_semantics<parallel>], iteration_bounds = array<i64: 1>, scalar_prefetch = 0 : i64, scratch_operands = 0 : i64, tpu.core_type = #tpu.core_type<tc>, window_params = [{transform_indices = @transform_0, window_bounds = array<i64: 8, 32>}, {pipeline_mode = #tpu.pipeline_mode<synchronous>, transform_indices = @transform_1, window_bounds = array<i64: 32, 128>}, {pipeline_mode = #tpu.pipeline_mode<synchronous>, transform_indices = @transform_2, window_bounds = array<i64: 1, 128>}, {transform_indices = @transform_3, window_bounds = array<i64: 1, 8, 128>}, {transform_indices = @transform_4, window_bounds = array<i64: 1, 8, 128>}]} {
    %c0 = arith.constant 0 : index
    %c0_0 = arith.constant 0 : index
    %0 = vector.load %arg1[%c0, %c0_0] : memref<8x32xf32, #tpu.memory_space<vmem>>, vector<8x32xf32>
    %c0_1 = arith.constant 0 : index
    %c0_2 = arith.constant 0 : index
    %1 = vector.load %arg2[%c0_1, %c0_2] : memref<32x128xf32, #tpu.memory_space<vmem>>, vector<32x128xf32>
    %cst = arith.constant dense<0.000000e+00> : vector<8x128xf32>
    %2 = tpu.matmul %0, %1, %cst {dimension_numbers = #tpu.dot_dimension_numbers<[1], [0], [0], [1], [0, 0, 1, 1], [], []>} : vector<8x32xf32>, vector<32x128xf32>, vector<8x128xf32> -> vector<8x128xf32>
    %c0_3 = arith.constant 0 : index
    %c0_4 = arith.constant 0 : index
    %3 = vector.load %arg3[%c0_3, %c0_4] : memref<1x128xf32, #tpu.memory_space<vmem>>, vector<1x128xf32>
    %4 = vector.broadcast %3 : vector<1x128xf32> to vector<8x128xf32>
    %5 = arith.addf %2, %4 : vector<8x128xf32>
    %cst_5 = arith.constant 0.000000e+00 : f32
    %6 = vector.broadcast %cst_5 : f32 to vector<8x128xf32>
    %7 = arith.cmpf ogt, %5, %6 : vector<8x128xf32>
    %cst_6 = arith.constant 2.000000e-01 : f32
    %8 = vector.broadcast %cst_6 : f32 to vector<8x128xf32>
    %9 = arith.mulf %8, %5 : vector<8x128xf32>
    %10 = arith.select %7, %5, %9 : vector<8x128xi1>, vector<8x128xf32>
    %11 = vector.shape_cast %10 : vector<8x128xf32> to vector<1x8x128xf32>
    %cst_7 = arith.constant dense<0.000000e+00> : vector<8x128xf32>
    %12 = vector.multi_reduction <add>, %11, %cst_7 [0] : vector<1x8x128xf32> to vector<8x128xf32>
    %13 = vector.shape_cast %12 : vector<8x128xf32> to vector<1x8x128xf32>
    %c0_8 = arith.constant 0 : index
    %c0_9 = arith.constant 0 : index
    %c0_10 = arith.constant 0 : index
    %14 = vector.load %arg4[%c0_8, %c0_9, %c0_10] : memref<1x8x128xf32, #tpu.memory_space<vmem>>, vector<1x8x128xf32>
    tpu.vector_store %arg4[%c0_8, %c0_9, %c0_10], %13 {strides = array<i32>} : memref<1x8x128xf32, #tpu.memory_space<vmem>>, vector<1x8x128xf32>,
    %15 = arith.mulf %11, %11 : vector<1x8x128xf32>
    %cst_11 = arith.constant dense<0.000000e+00> : vector<8x128xf32>
    %16 = vector.multi_reduction <add>, %15, %cst_11 [0] : vector<1x8x128xf32> to vector<8x128xf32>
    %17 = vector.shape_cast %16 : vector<8x128xf32> to vector<1x8x128xf32>
    %c0_12 = arith.constant 0 : index
    %c0_13 = arith.constant 0 : index
    %c0_14 = arith.constant 0 : index
    %18 = vector.load %arg5[%c0_12, %c0_13, %c0_14] : memref<1x8x128xf32, #tpu.memory_space<vmem>>, vector<1x8x128xf32>
    tpu.vector_store %arg5[%c0_12, %c0_13, %c0_14], %17 {strides = array<i32>} : memref<1x8x128xf32, #tpu.memory_space<vmem>>, vector<1x8x128xf32>,
    return
  }
  func.func @transform_0(%arg0: i32) -> (i32, i32) {
    %c0_i32 = arith.constant 0 : i32
    %c0_i32_0 = arith.constant 0 : i32
    return %arg0, %c0_i32 : i32, i32
  }
  func.func @transform_1(%arg0: i32) -> (i32, i32) {
    %c0_i32 = arith.constant 0 : i32
    %c0_i32_0 = arith.constant 0 : i32
    %c0_i32_1 = arith.constant 0 : i32
    return %c0_i32, %c0_i32_0 : i32, i32
  }
  func.func @transform_2(%arg0: i32) -> (i32, i32) {
    %c0_i32 = arith.constant 0 : i32
    %c0_i32_0 = arith.constant 0 : i32
    %c0_i32_1 = arith.constant 0 : i32
    return %c0_i32, %c0_i32_0 : i32, i32
  }
  func.func @transform_3(%arg0: i32) -> (i32, i32, i32) {
    %c0_i32 = arith.constant 0 : i32
    %c0_i32_0 = arith.constant 0 : i32
    %c0_i32_1 = arith.constant 0 : i32
    return %arg0, %c0_i32, %c0_i32_0 : i32, i32, i32
  }
  func.func @transform_4(%arg0: i32) -> (i32, i32, i32) {
    %c0_i32 = arith.constant 0 : i32
    %c0_i32_0 = arith.constant 0 : i32
    %c0_i32_1 = arith.constant 0 : i32
    return %arg0, %c0_i32, %c0_i32_0 : i32, i32, i32
  }
}

</mosaic_0001>

<bundles_post_ra>
// kernel: tpu_custom_call.1
= control target key start
LH: loop header
LB: loop body
LE: loop exit
PB: predicated region body
PF: predicated region fallthrough
CT: control target
= control target key end

     0   :  { %10 = vsyncpa [#allocation3], 0  ;;  %s389_s0 = inlined_call_operand.hbm [shape: f32[8,32], index: 0, kind: input, shape index: {}]   ;;  %s390_s1 = inlined_call_operand.hbm [shape: f32[32,128], index: 1, kind: input, shape index: {}]   ;;  %s391_s2 = inlined_call_operand.vmem [shape: f32[1,128], index: 2, kind: input, shape index: {}]   ;;  %s392_s3 = inlined_call_operand.hbm [shape: f32[1,8,128], index: 3, kind: output, shape index: {0}]   ;;  %s393_s4 = inlined_call_operand.hbm [shape: f32[1,8,128], index: 4, kind: output, shape index: {1}]  }
   0x1   :  { %11 = vsyncpa [#allocation6], 0 }
   0x2   :  { %12 = vsyncpa [#allocation4], 0 }
   0x3   :  { %13 = vsyncpa [#allocation9], 0  ;;  %s297_s15 = smov [#allocation2]   ;;  %s298_s17 = smov [#allocation5]  }
   0x4   :  { %s20_s16 = sshll.u32 %s297_s15, 4  ;;  %s29_s18 = sshll.u32 %s298_s17, 4  ;;  %s21_s16 = int_to_ptr.vmem [resolvable:$true] %s20_s16  ;;  %s331_s18 = int_to_ptr.vmem [resolvable:$true] %s29_s18 }
   0x5   :  { %s201_s21 = scalar_lea.hbm %s389_s0, 128 }
   0x6   :  { %p202_p0 = scmp.ne.s32.totalorder %s389_s0, %s201_s21  ;;  %p205_p1 = scmp.lt.u32.totalorder %s201_s21, %s389_s0 }
   0x8   :  { %p207_p2 = pnand %p205_p1, %p202_p0 }
   0xa   :  { %210 = shalt.err (!%p207_p2)
}
   0xb   :  { %s211_s26 = scalar_lea.vmem %s21_s16, 128  ;;  %p216_p4 = scmp.lt.s32.totalorder %s21_s16, %s21_s16 }
   0xc   :  { %p212_p3 = scmp.ne.s32.totalorder %s21_s16, %s211_s26  ;;  %p217_p5 = scmp.lt.s32.totalorder %s211_s26, %s211_s26 }
   0xe   :  { %p218_p6 = por %p217_p5, %p216_p4 }
  0x10   :  { %p219_p7 = pnand %p218_p6, %p212_p3 }
  0x12   :  { %222 = shalt.err (!%p219_p7)
}
  0x13   :  { %23 = dma.hbm_to_vmem [thread:$0]  %s389_s0, 128, %s21_s16, [#allocation3]  }
  0x14   :  { %s223_s5 = scalar_lea.hbm %s390_s1, 512 }
  0x15   :  { %p224_p8 = scmp.ne.s32.totalorder %s390_s1, %s223_s5  ;;  %p227_p9 = scmp.lt.u32.totalorder %s223_s5, %s390_s1 }
  0x17   :  { %p229_p10 = pnand %p227_p9, %p224_p8 }
  0x19   :  { %232 = shalt.err (!%p229_p10)
}
  0x1a   :  { %s233_s10 = scalar_lea.vmem %s331_s18, 512  ;;  %p238_p12 = scmp.lt.s32.totalorder %s331_s18, %s331_s18 }
  0x1b   :  { %p234_p11 = scmp.ne.s32.totalorder %s331_s18, %s233_s10  ;;  %p239_p13 = scmp.lt.s32.totalorder %s233_s10, %s233_s10 }
  0x1d   :  { %p240_p0 = por %p239_p13, %p238_p12 }
  0x1f   :  { %p241_p1 = pnand %p240_p0, %p234_p11 }
  0x21   :  { %244 = shalt.err (!%p241_p1)
}
  0x22   :  { %s299_s0 = smov 128   ;;  %s300_s11 = smov 8  }
  0x23   :  { %35 = dma.hbm_to_vmem [thread:$0]  %s390_s1, 512, %s331_s18, [#allocation6], %s299_s0, %s299_s0, %s300_s11  }
  0x24   :  { %289 = dma.done.wait [#allocation3], 128  }
  0x25   :  { %290 = vsyncadd [#allocation3], 4294967168 }
  0x26   :  { %291 = dma.done.wait [#allocation6], 512  }
  0x27   :  { %292 = vsyncadd [#allocation6], 4294966784  ;;  %v301_v0 = vmov 0.0|0.0   ;;  %vm302_vm0 = vmmov 0   ;;  %v303_v1 = vmov 0.0   ;;  %v45_v2 = vld [vmem:[#allocation5] sm:$0xff] }
  0x28   :  { %186 = vmatprep.subr.bf16.mxu0 %v301_v0  ;;  %183 = vmatprep.mubr.msk.f32.mxu0 %vm302_vm0, %v303_v1  ;;  %v46_v3 = vld [vmem:[#allocation5 + $0x8] sm:$0xff]  ;;  %v47_v4 = vld [vmem:[#allocation5 + $0x10] sm:$0xff]  ;;  %v48_v6 = vld [vmem:[#allocation5 + $0x18] sm:$0xff]  ;;  %vm56_vm1 = vcmask 261120   ;;  %s304_s15 = smov [#allocation7]   ;;  %s305_s17 = smov [#allocation8]  }
  0x29   :  { %v187_v5 = vpack.c.bf16 %v46_v3, %v45_v2  ;;  %v190_v7 = vpack.c.bf16 %v48_v6, %v47_v4  ;;  %v44_v8 = vld [vmem:[#allocation2] sm:$0xff]  ;;  %s144_s16 = sshll.u32 %s304_s15, 4  ;;  %s154_s18 = sshll.u32 %s305_s17, 4  ;;  %s145_s16 = int_to_ptr.vmem [resolvable:$true] %s144_s16  ;;  %s155_s18 = int_to_ptr.vmem [resolvable:$true] %s154_s18 }
  0x2a   :  { %v168_v9 = vld [vmem:[%s391_s2] ss:$0 sm:$0xff]  ;;  %s245_s19 = scalar_lea.vmem %s145_s16, 128  ;;  %p250_p3 = scmp.lt.s32.totalorder %s145_s16, %s145_s16 }
  0x2b   :  { %188 = vmatpush3.bf16.msra.mxu0 %v187_v5  ;;  %p246_p2 = scmp.ne.s32.totalorder %s145_s16, %s245_s19  ;;  %p251_p4 = scmp.lt.s32.totalorder %s245_s19, %s245_s19 }
  0x2c   :  { %189 = vmatprep.subr.bf16.mxu0 %v301_v0 }
  0x2d   :  { %p252_p5 = por %p251_p4, %p250_p3 }
  0x2f   :  { %191 = vmatpush3.bf16.msra.mxu0 %v190_v7  ;;  %p253_p6 = pnand %p252_p5, %p246_p2 }
  0x32   :  { %184 = vmatmul.mubr.msk.f32.vlgmr.msra.gmra.mrb[0].mxu0 %vm56_vm1, %v44_v8 }
 0x105   :  { %v126_v10 = vpop.f32.mrb[0].mxu0 }
 0x106   :  { %v127_v11 = vadd.f32 %v168_v9, %v126_v10  ;;  %v185_v12 = vpop.f32.mrb[1].mxu0 }
 0x108   :  { %v131_v13 = vmul.f32 0.2, %v127_v11  ;;  %vm130_vm2 = vcmp.gt.f32.partialorder %v127_v11, 0.0 }
 0x10a   :  { %v132_v14 = vsel %vm130_vm2, %v127_v11, %v131_v13 }
 0x10b   :  { %134 = vst [vmem:[#allocation7] sm:$0xff] %v132_v14  ;;  %v135_v15 = vmul.f32 %v132_v14, %v132_v14 }
 0x10c   :  { %256 = shalt.err (!%p253_p6)
}
 0x10d   :  { %s257_s21 = scalar_lea.hbm %s392_s3, 128 }
 0x10e   :  { %p258_p7 = scmp.ne.s32.totalorder %s392_s3, %s257_s21  ;;  %p261_p8 = scmp.lt.u32.totalorder %s257_s21, %s392_s3 }
 0x110   :  { %p263_p9 = pnand %p261_p8, %p258_p7 }
 0x112   :  { %266 = shalt.err (!%p263_p9)
}
 0x113   :  { %147 = dma.vmem_to_hbm [thread:$0]  %s145_s16, 128, %s392_s3, [#allocation4]   ;;  %137 = vst [vmem:[#allocation8] sm:$0xff] %v135_v15 }
 0x114   :  { %s267_s28 = scalar_lea.vmem %s155_s18, 128  ;;  %p272_p11 = scmp.lt.s32.totalorder %s155_s18, %s155_s18 }
 0x115   :  { %p268_p10 = scmp.ne.s32.totalorder %s155_s18, %s267_s28  ;;  %p273_p12 = scmp.lt.s32.totalorder %s267_s28, %s267_s28 }
 0x117   :  { %p274_p13 = por %p273_p12, %p272_p11 }
 0x119   :  { %p275_p0 = pnand %p274_p13, %p268_p10 }
 0x11b   :  { %278 = shalt.err (!%p275_p0)
}
 0x11c   :  { %s279_s5 = scalar_lea.hbm %s393_s4, 128 }
 0x11d   :  { %p280_p1 = scmp.ne.s32.totalorder %s393_s4, %s279_s5  ;;  %p283_p2 = scmp.lt.u32.totalorder %s279_s5, %s393_s4 }
 0x11f   :  { %p285_p3 = pnand %p283_p2, %p280_p1 }
 0x121   :  { %288 = shalt.err (!%p285_p3)
}
 0x122   :  { %157 = dma.vmem_to_hbm [thread:$0]  %s155_s18, 128, %s393_s4, [#allocation9]  }
 0x123   :  { %293 = dma.done.wait [#allocation4], 128  }
 0x124   :  { %294 = vsyncadd [#allocation4], 4294967168 }
 0x125   :  { %295 = dma.done.wait [#allocation9], 128  }
 0x126   :  { %296 = vsyncadd [#allocation9], 4294967168 }
 0x127   :  { %164 = vsyncpa [#allocation3], 1 }
 0x128   :  { %165 = vsyncpa [#allocation6], 1 }
 0x129   :  { %166 = vsyncpa [#allocation4], 1 }
 0x12a   :  { %167 = vsyncpa [#allocation9], 1 }

</bundles_post_ra>
